<compile_context>
chip_gen: v6e
topology: v6e:2x2x1
jax: 0.10.0
libtpu: 0.0.40
codegen_flags: <defaults>
</compile_context>

<pallas_src>
import functools

import jax
import jax.numpy as jnp
import numpy as np
from jax import lax
from jax.experimental import pallas as pl
from jax.experimental.pallas import tpu as pltpu


def _round_up(x, m):
    return (x + m - 1) // m * m


def _block2vec_kernel(
    # scalar-prefetch refs (SMEM)
    cen_ids_ref,    # (N_pad,) int32 — center id per pair (expanded B -> B*C)
    ctx_ids_ref,    # (N_pad,) int32 — context id per pair
    # inputs (full-array VMEM blocks, resident across the whole grid)
    in_emb_ref,     # (V, D) emb dtype
    out_emb_ref,    # (V, D) emb dtype
    # output
    loss_ref,       # (1, 1) float32 — written on the last grid step only
    # scratch (VMEM, persists across grid steps)
    cen_buf,        # (tile_n, D) emb dtype — gathered center rows
    ctx_buf,        # (tile_n, D) emb dtype — gathered context rows
    acc_ref,        # (tile_n, 1) float32 — per-row running softplus sum
    *,
    tile_n,
    n_true,
    n_pad,
):
    i = pl.program_id(0)
    nsteps = pl.num_programs(0)
    base = i * tile_n

    @pl.when(i == 0)
    def _():
        acc_ref[...] = jnp.zeros_like(acc_ref)

    # In-VMEM row gather: tables are resident in VMEM, so each row lookup is a
    # dynamic-offset vector load + store (no DMA, no semaphores).
    def gather_row(r, carry):
        cid = cen_ids_ref[base + r]
        xid = ctx_ids_ref[base + r]
        cen_buf[pl.ds(r, 1), :] = in_emb_ref[pl.ds(cid, 1), :]
        ctx_buf[pl.ds(r, 1), :] = out_emb_ref[pl.ds(xid, 1), :]
        return carry

    lax.fori_loop(0, tile_n, gather_row, 0)

    # scores_r = <center_r, context_r>  (VPU multiply + lane reduce; no MXU work)
    cvec = cen_buf[...].astype(jnp.float32)
    xvec = ctx_buf[...].astype(jnp.float32)
    scores = jnp.sum(cvec * xvec, axis=1, keepdims=True)           # (tile_n, 1)

    # BCE-with-logits vs. target 1.0  ==  softplus(-scores), numerically stable.
    x = -scores
    softplus = jnp.maximum(x, 0.0) + jnp.log1p(jnp.exp(-jnp.abs(x)))

    if n_pad != n_true:
        # Only the last tile can contain padded pairs — mask them there only.
        last = nsteps - 1

        @pl.when(i == last)
        def _():
            row = base + lax.broadcasted_iota(jnp.int32, (tile_n, 1), 0)
            acc_ref[...] += jnp.where(row < n_true, softplus, 0.0)

        @pl.when(i != last)
        def _():
            acc_ref[...] += softplus
    else:
        acc_ref[...] += softplus

    @pl.when(i == nsteps - 1)
    def _():
        total = jnp.sum(acc_ref[...], axis=0, keepdims=True)       # (1, 1)
        loss_ref[...] = total * (1.0 / jnp.float32(n_true))


def block2vec_loss(center_ids, context_ids, in_embed, out_embed, *, max_tile_n=256):
    """JAX wrapper mirroring Block2Vec.forward (returns the scalar loss)."""
    b, c = context_ids.shape
    n_true = b * c
    v, d = in_embed.shape
    assert out_embed.shape == (v, d)
    emb_dtype = in_embed.dtype

    # Both tables must fit comfortably in VMEM (true for Block2Vec-scale vocabs).
    table_bytes = 2 * v * d * jnp.dtype(emb_dtype).itemsize
    assert table_bytes <= 24 * 1024 * 1024, (
        "embedding tables too large for the all-in-VMEM fast path")
    # TODO(synk): add an HBM-streaming gather path for vocabularies that exceed VMEM.

    # Pairs per grid step: one decent-sized tile; tiny problems use a single step.
    tile_n = min(max_tile_n, _round_up(n_true, 8))
    n_pad = _round_up(n_true, tile_n)
    num_tiles = n_pad // tile_n

    # Flatten ids exactly like the PyTorch forward, then pad N to a tile multiple
    # (padded pairs use id 0 — always in range — and are masked out of the sum).
    cen_flat = jnp.broadcast_to(
        center_ids[:, None], (b, c)).reshape(-1).astype(jnp.int32)
    ctx_flat = context_ids.reshape(-1).astype(jnp.int32)
    if n_pad != n_true:
        cen_flat = jnp.pad(cen_flat, (0, n_pad - n_true))
        ctx_flat = jnp.pad(ctx_flat, (0, n_pad - n_true))
    # TODO(synk): chunk ids at the wrapper level for very large B*C (1-D SMEM arrays
    # pad to the next power of two in bytes).

    kernel = functools.partial(
        _block2vec_kernel, tile_n=tile_n, n_true=n_true, n_pad=n_pad)

    out = pl.pallas_call(
        kernel,
        out_shape=jax.ShapeDtypeStruct((1, 1), jnp.float32),
        grid_spec=pltpu.PrefetchScalarGridSpec(
            num_scalar_prefetch=2,                   # center ids, context ids -> SMEM
            grid=(num_tiles,),
            in_specs=[
                # Full tables resident in VMEM; constant block index -> DMA'd once.
                pl.BlockSpec((v, d), lambda i, cen, ctx: (0, 0)),
                pl.BlockSpec((v, d), lambda i, cen, ctx: (0, 0)),
            ],
            out_specs=pl.BlockSpec((1, 1), lambda i, cen, ctx: (0, 0)),
            scratch_shapes=[
                pltpu.VMEM((tile_n, d), emb_dtype),      # gathered center rows
                pltpu.VMEM((tile_n, d), emb_dtype),      # gathered context rows
                pltpu.VMEM((tile_n, 1), jnp.float32),    # per-row loss accumulator
            ],
        ),
        compiler_params=pltpu.CompilerParams(
            dimension_semantics=("arbitrary",)),
    )(cen_flat, ctx_flat, in_embed, out_embed)
    return out[0, 0]


def _reference_loss(center_ids, context_ids, in_embed, out_embed):
    """Pure-JAX reference of the PyTorch forward (for verification)."""
    b, c = context_ids.shape
    cen = jnp.broadcast_to(center_ids[:, None], (b, c)).reshape(-1)
    ctx = context_ids.reshape(-1)
    center_vec = in_embed[cen].astype(jnp.float32)
    context_vec = out_embed[ctx].astype(jnp.float32)
    scores = jnp.sum(center_vec * context_vec, axis=1)
    return jnp.mean(jax.nn.softplus(-scores))


if __name__ == "__main__":
    vocab_size = 16
    embedding_dim = 32
    batch_size = 2
    context_len = 8

    key = jax.random.PRNGKey(0)
    k_in, k_out, k_cen, k_ctx = jax.random.split(key, 4)

    # Deterministic parameter init (nn.Embedding default: N(0, 1)).
    in_embed = jax.random.normal(k_in, (vocab_size, embedding_dim), dtype=jnp.float32)
    out_embed = jax.random.normal(k_out, (vocab_size, embedding_dim), dtype=jnp.float32)

    center_ids = jax.random.randint(k_cen, (batch_size,), 0, vocab_size, dtype=jnp.int32)
    context_ids = jax.random.randint(k_ctx, (batch_size, context_len), 0, vocab_size,
                                     dtype=jnp.int32)

    loss = block2vec_loss(center_ids, context_ids, in_embed, out_embed)
    loss = jax.block_until_ready(loss)

    ref = jax.block_until_ready(
        _reference_loss(center_ids, context_ids, in_embed, out_embed))
    assert np.allclose(np.asarray(loss), np.asarray(ref), rtol=1e-5, atol=1e-5), (
        f"mismatch: kernel={float(loss)} ref={float(ref)}")

    print("KERNEL_OK")
</pallas_src>

<mosaic_0001>
module attributes {stable_mosaic.version = 11 : i64} {
  func.func @_block2vec_kernel(%arg0: i32, %arg1: memref<16xi32, #tpu.memory_space<smem>>, %arg2: memref<16xi32, #tpu.memory_space<smem>>, %arg3: memref<16x32xf32, #tpu.memory_space<vmem>>, %arg4: memref<16x32xf32, #tpu.memory_space<vmem>>, %arg5: memref<1x1xf32, #tpu.memory_space<vmem>>, %arg6: memref<16x32xf32, #tpu.memory_space<vmem>>, %arg7: memref<16x32xf32, #tpu.memory_space<vmem>>, %arg8: memref<16x1xf32, #tpu.memory_space<vmem>>) attributes {dimension_semantics = [#tpu.dimension_semantics<arbitrary>], iteration_bounds = array<i64: 1>, scalar_prefetch = 2 : i64, scratch_operands = 3 : i64, tpu.core_type = #tpu.core_type<tc>, window_params = [{pipeline_mode = #tpu.pipeline_mode<synchronous>, transform_indices = @transform_0, window_bounds = array<i64: 16, 32>}, {pipeline_mode = #tpu.pipeline_mode<synchronous>, transform_indices = @transform_1, window_bounds = array<i64: 16, 32>}, {pipeline_mode = #tpu.pipeline_mode<synchronous>, transform_indices = @transform_2, window_bounds = array<i64: 1, 1>}]} {
    %c16_i32 = arith.constant 16 : i32
    %0 = arith.muli %arg0, %c16_i32 : i32
    %c0_i32 = arith.constant 0 : i32
    %1 = arith.cmpi eq, %arg0, %c0_i32 : i32
    %2 = arith.extui %1 : i1 to i32
    %c0_i32_0 = arith.constant 0 : i32
    %3 = arith.cmpi ne, %2, %c0_i32_0 : i32
    scf.if %3 {
      %cst_16 = arith.constant 0.000000e+00 : f32
      %26 = vector.broadcast %cst_16 : f32 to vector<16x1xf32>
      %c0_17 = arith.constant 0 : index
      %c0_18 = arith.constant 0 : index
      %27 = vector.load %arg8[%c0_17, %c0_18] : memref<16x1xf32, #tpu.memory_space<vmem>>, vector<16x1xf32>
      tpu.vector_store %arg8[%c0_17, %c0_18], %26 {strides = array<i32>} : memref<16x1xf32, #tpu.memory_space<vmem>>, vector<16x1xf32>,
    } else {
    }
    %c0_i32_1 = arith.constant 0 : i32
    %c16_i32_2 = arith.constant 16 : i32
    %4 = arith.addi %c0_i32_1, %c16_i32_2 : i32
    %c1_i32 = arith.constant 1 : i32
    scf.for %arg9 = %c0_i32_1 to %4 step %c1_i32  : i32 {
      %26 = arith.addi %0, %arg9 : i32
      %27 = arith.index_cast %26 : i32 to index
      %28 = memref.load %arg1[%27] : memref<16xi32, #tpu.memory_space<smem>>
      %29 = arith.addi %0, %arg9 : i32
      %30 = arith.index_cast %29 : i32 to index
      %31 = memref.load %arg2[%30] : memref<16xi32, #tpu.memory_space<smem>>
      %32 = arith.index_cast %28 : i32 to index
      %c0_16 = arith.constant 0 : index
      %33 = vector.load %arg3[%32, %c0_16] : memref<16x32xf32, #tpu.memory_space<vmem>>, vector<1x32xf32>
      %34 = arith.index_cast %arg9 : i32 to index
      %c0_17 = arith.constant 0 : index
      %35 = vector.load %arg6[%34, %c0_17] : memref<16x32xf32, #tpu.memory_space<vmem>>, vector<1x32xf32>
      tpu.vector_store %arg6[%34, %c0_17], %33 {strides = array<i32>} : memref<16x32xf32, #tpu.memory_space<vmem>>, vector<1x32xf32>,
      %36 = arith.index_cast %31 : i32 to index
      %c0_18 = arith.constant 0 : index
      %37 = vector.load %arg4[%36, %c0_18] : memref<16x32xf32, #tpu.memory_space<vmem>>, vector<1x32xf32>
      %38 = arith.index_cast %arg9 : i32 to index
      %c0_19 = arith.constant 0 : index
      %39 = vector.load %arg7[%38, %c0_19] : memref<16x32xf32, #tpu.memory_space<vmem>>, vector<1x32xf32>
      tpu.vector_store %arg7[%38, %c0_19], %37 {strides = array<i32>} : memref<16x32xf32, #tpu.memory_space<vmem>>, vector<1x32xf32>,
    }
    %c16_i32_3 = arith.constant 16 : i32
    %c0 = arith.constant 0 : index
    %c0_4 = arith.constant 0 : index
    %5 = vector.load %arg6[%c0, %c0_4] : memref<16x32xf32, #tpu.memory_space<vmem>>, vector<16x32xf32>
    %c0_5 = arith.constant 0 : index
    %c0_6 = arith.constant 0 : index
    %6 = vector.load %arg7[%c0_5, %c0_6] : memref<16x32xf32, #tpu.memory_space<vmem>>, vector<16x32xf32>
    %7 = arith.mulf %5, %6 : vector<16x32xf32>
    %cst = arith.constant dense<0.000000e+00> : vector<16xf32>
    %8 = vector.multi_reduction <add>, %7, %cst [1] : vector<16x32xf32> to vector<16xf32>
    %9 = vector.shape_cast %8 : vector<16xf32> to vector<16x1xf32>
    %cst_7 = arith.constant 0.000000e+00 : f32
    %10 = vector.broadcast %cst_7 : f32 to vector<16x1xf32>
    %11 = arith.subf %10, %9 : vector<16x1xf32>
    %cst_8 = arith.constant 0.000000e+00 : f32
    %12 = vector.broadcast %cst_8 : f32 to vector<16x1xf32>
    %13 = arith.maximumf %11, %12 : vector<16x1xf32>
    %14 = math.absf %11 : vector<16x1xf32>
    %cst_9 = arith.constant 0.000000e+00 : f32
    %15 = vector.broadcast %cst_9 : f32 to vector<16x1xf32>
    %16 = arith.subf %15, %14 : vector<16x1xf32>
    %17 = math.exp %16 : vector<16x1xf32>
    %18 = math.log1p %17 : vector<16x1xf32>
    %19 = arith.addf %13, %18 : vector<16x1xf32>
    %c0_10 = arith.constant 0 : index
    %c0_11 = arith.constant 0 : index
    %20 = vector.load %arg8[%c0_10, %c0_11] : memref<16x1xf32, #tpu.memory_space<vmem>>, vector<16x1xf32>
    %21 = arith.addf %20, %19 : vector<16x1xf32>
    %c0_12 = arith.constant 0 : index
    %c0_13 = arith.constant 0 : index
    %22 = vector.load %arg8[%c0_12, %c0_13] : memref<16x1xf32, #tpu.memory_space<vmem>>, vector<16x1xf32>
    tpu.vector_store %arg8[%c0_12, %c0_13], %21 {strides = array<i32>} : memref<16x1xf32, #tpu.memory_space<vmem>>, vector<16x1xf32>,
    %c0_i32_14 = arith.constant 0 : i32
    %23 = arith.cmpi eq, %arg0, %c0_i32_14 : i32
    %24 = arith.extui %23 : i1 to i32
    %c0_i32_15 = arith.constant 0 : i32
    %25 = arith.cmpi ne, %24, %c0_i32_15 : i32
    scf.if %25 {
      %c0_16 = arith.constant 0 : index
      %c0_17 = arith.constant 0 : index
      %26 = vector.load %arg8[%c0_16, %c0_17] : memref<16x1xf32, #tpu.memory_space<vmem>>, vector<16x1xf32>
      %cst_18 = arith.constant dense<0.000000e+00> : vector<1xf32>
      %27 = vector.multi_reduction <add>, %26, %cst_18 [0] : vector<16x1xf32> to vector<1xf32>
      %28 = vector.shape_cast %27 : vector<1xf32> to vector<1x1xf32>
      %cst_19 = arith.constant 1.000000e+00 : f32
      %cst_20 = arith.constant 1.600000e+01 : f32
      %29 = arith.divf %cst_19, %cst_20 : f32
      %30 = vector.broadcast %29 : f32 to vector<1x1xf32>
      %31 = arith.mulf %28, %30 : vector<1x1xf32>
      %c0_21 = arith.constant 0 : index
      %c0_22 = arith.constant 0 : index
      %32 = vector.load %arg5[%c0_21, %c0_22] : memref<1x1xf32, #tpu.memory_space<vmem>>, vector<1x1xf32>
      tpu.vector_store %arg5[%c0_21, %c0_22], %31 {strides = array<i32>} : memref<1x1xf32, #tpu.memory_space<vmem>>, vector<1x1xf32>,
    } else {
    }
    return
  }
  func.func @transform_0(%arg0: i32, %arg1: memref<16xi32, #tpu.memory_space<smem>>, %arg2: memref<16xi32, #tpu.memory_space<smem>>) -> (i32, i32) {
    %c0_i32 = arith.constant 0 : i32
    %c0_i32_0 = arith.constant 0 : i32
    %c0_i32_1 = arith.constant 0 : i32
    return %c0_i32, %c0_i32_0 : i32, i32
  }
  func.func @transform_1(%arg0: i32, %arg1: memref<16xi32, #tpu.memory_space<smem>>, %arg2: memref<16xi32, #tpu.memory_space<smem>>) -> (i32, i32) {
    %c0_i32 = arith.constant 0 : i32
    %c0_i32_0 = arith.constant 0 : i32
    %c0_i32_1 = arith.constant 0 : i32
    return %c0_i32, %c0_i32_0 : i32, i32
  }
  func.func @transform_2(%arg0: i32, %arg1: memref<16xi32, #tpu.memory_space<smem>>, %arg2: memref<16xi32, #tpu.memory_space<smem>>) -> (i32, i32) {
    %c0_i32 = arith.constant 0 : i32
    %c0_i32_0 = arith.constant 0 : i32
    %c0_i32_1 = arith.constant 0 : i32
    return %c0_i32, %c0_i32_0 : i32, i32
  }
}

</mosaic_0001>

<bundles_post_ra>
// kernel: tpu_custom_call.1
= control target key start
LH: loop header
LB: loop body
LE: loop exit
PB: predicated region body
PF: predicated region fallthrough
CT: control target
= control target key end

     0   :  { %s290_s15 = smov [#allocation6]   ;;  %s344_s0 = inlined_call_operand.hbm [shape: s32[16], index: 0, kind: input, shape index: {}]   ;;  %s345_s2 = inlined_call_operand.hbm [shape: f32[16,32], index: 2, kind: input, shape index: {}]   ;;  %s346_s3 = inlined_call_operand.hbm [shape: f32[16,32], index: 3, kind: input, shape index: {}]   ;;  %s347_s4 = inlined_call_operand.hbm [shape: f32[1,1], index: 4, kind: output, shape index: {}]   ;;  %s348_s1 = inlined_call_operand.vmem [shape: s32[16], index: 1, kind: input, shape index: {}]  }
   0x1   :  { %10 = dma.hbm_to_smem %s344_s0, 16, %s290_s15, [#allocation5] }
   0x2   :  { %s11_s20 = sshll.u32 %s348_s1, 4  ;;  %s12_s20 = int_to_ptr.vmem [resolvable:$true] %s11_s20 }
   0x3   :  { %s202_s21 = scalar_lea.vmem %s12_s20, 16  ;;  %p207_p1 = scmp.lt.s32.totalorder %s12_s20, %s12_s20 }
   0x4   :  { %p203_p0 = scmp.ne.s32.totalorder %s12_s20, %s202_s21  ;;  %p208_p2 = scmp.lt.s32.totalorder %s202_s21, %s202_s21 }
   0x6   :  { %p209_p3 = por %p208_p2, %p207_p1 }
   0x8   :  { %p210_p4 = pnand %p209_p3, %p203_p0 }
   0xa   :  { %213 = shalt.err (!%p210_p4)  }
   0xb   :  { %s291_s22 = smov [#allocation7]  }
   0xc   :  { %14 = dma.vmem_to_smem %s12_s20, 16, %s291_s22, [#allocation5] }
   0xd   :  { %278 = dma.done.wait [#allocation5], 32 }
   0xe   :  { %279 = vsyncadd [#allocation5], 4294967264 }
   0xf   :  { %16 = sfence }
  0x10   :  { %17 = vsyncpa [#allocation9], 0 }
  0x11   :  { %18 = vsyncpa [#allocation12], 0 }
  0x12   :  { %19 = vsyncpa [#allocation10], 0  ;;  %s292_s0 = smov [#allocation8]  }
  0x13   :  { %s25_s23 = sshll.u32 %s292_s0, 4  ;;  %s26_s23 = int_to_ptr.vmem [resolvable:$true] %s25_s23 }
  0x14   :  { %s222_s1 = scalar_lea.vmem %s26_s23, 256  ;;  %p227_p6 = scmp.lt.s32.totalorder %s26_s23, %s26_s23 }
  0x15   :  { %p223_p5 = scmp.ne.s32.totalorder %s26_s23, %s222_s1  ;;  %p228_p7 = scmp.lt.s32.totalorder %s222_s1, %s222_s1 }
  0x17   :  { %p229_p8 = por %p228_p7, %p227_p6 }
  0x19   :  { %p230_p9 = pnand %p229_p8, %p223_p5 }
  0x1b   :  { %233 = shalt.err (!%p230_p9)
}
  0x1c   :  { %s293_s24 = smov 128   ;;  %s294_s25 = smov 8  }
  0x1d   :  { %31 = dma.hbm_to_vmem [thread:$0]  %s345_s2, 256, %s26_s23, [#allocation9], %s293_s24, %s293_s24, %s294_s25  }
  0x1e   :  { %s295_s28 = smov [#allocation11]  }
  0x1f   :  { %s37_s29 = sshll.u32 %s295_s28, 4  ;;  %s38_s29 = int_to_ptr.vmem [resolvable:$true] %s37_s29 }
  0x20   :  { %s242_s30 = scalar_lea.vmem %s38_s29, 256  ;;  %p247_p11 = scmp.lt.s32.totalorder %s38_s29, %s38_s29 }
  0x21   :  { %p243_p10 = scmp.ne.s32.totalorder %s38_s29, %s242_s30  ;;  %p248_p12 = scmp.lt.s32.totalorder %s242_s30, %s242_s30 }
  0x23   :  { %p249_p13 = por %p248_p12, %p247_p11 }
  0x25   :  { %p250_p0 = pnand %p249_p13, %p243_p10 }
  0x27   :  { %253 = shalt.err (!%p250_p0)
}
  0x28   :  { %43 = dma.hbm_to_vmem [thread:$0]  %s346_s3, 256, %s38_s29, [#allocation12], %s293_s24, %s293_s24, %s294_s25  }
  0x29   :  { %280 = dma.done.wait [#allocation9], 256  }
  0x2a   :  { %281 = vsyncadd [#allocation9], 4294967040 }
  0x2b   :  { %282 = dma.done.wait [#allocation12], 256  }
  0x2c   :  { %283 = vsyncadd [#allocation12], 4294967040  ;;  %vm55_vm0 = vcmask 7168   ;;  %v296_v0 = vmov 0.0   ;;  %s286_s2 = smov 0  }
  0x2d   :  { %56 = vst.msk [vmem:[#allocation4] sm:$0xff] %vm55_vm0, %v296_v0  ;;  %57 = vst.msk [vmem:[#allocation4 + $0x8] sm:$0xff] %vm55_vm0, %v296_v0 }
  0x2e LB: > { %s65_s7 = sld [smem:[#allocation6 + %s288_s2]]  ;;  %vm70_vm1 = vcmask 253952   ;;  %s69_s3 = scalar_lea.vmem [#allocation2], %s288_s2  ;;  %s288_s2 = sphi %s286_s2, %s63_s2  }
  0x2f   : > { %s66_s8 = sld [smem:[#allocation7 + %s288_s2]]  ;;  %s74_s11 = scalar_lea.vmem [#allocation3], %s288_s2 }
  0x30   : > { %s63_s2 = sadd.s32 1, %s288_s2  }
  0x31   : > { %p60_p1 = scmp.ge.s32.totalorder %s63_s2, 16  }
  0x32   :  { %vm82_vm2 = vcmask (%p60_p1), 261120   ;;  %s297_s12 = smov (%p60_p1), [#allocation13]   ;;  %vm143_vm5 = vcmask (%p60_p1), 0  }
  0x33   :  { %62 = sbr.rel (!%p60_p1) target bundleno = 46 (0x2e), region = 55  ;;  %s151_s13 = sshll.u32 (%p60_p1), %s297_s12, 4  ;;  %s152_s13 = int_to_ptr.vmem [resolvable:$true] %s151_s13 }
  0x34   : > { %s67_s9 = scalar_lea.vmem [#allocation8], %s65_s7  ;;  %v121_v35 = vld [vmem:[#allocation4] sm:$0xff] (%p60_p1)  ;;  %v122_v43 = vld [vmem:[#allocation4 + $0x8] sm:$0xff] (%p60_p1)  ;;  %s254_s14 = scalar_lea.vmem (%p60_p1), %s152_s13, 16 }
  0x35   : > { %v68_v1 = vld [vmem:[%s67_s9] sm:$0x1]  ;;  %s72_s10 = scalar_lea.vmem [#allocation11], %s66_s8  ;;  %p255_p2 = scmp.ne.s32.totalorder (%p60_p1), %s152_s13, %s254_s14 }
  0x36   : > { %71 = vst.msk [vmem:[%s69_s3] sm:$0x1] %vm70_vm1, %v68_v1  ;;  %v73_v2 = vld [vmem:[%s72_s10] sm:$0x1]  ;;  %s258_s15 = scalar_lea.vmem (%p60_p1), %s152_s13, 32  ;;  %p259_p3 = scmp.lt.s32.totalorder (%p60_p1), %s152_s13, %s152_s13 }
  0x37   : > { %75 = vst.msk [vmem:[%s74_s11] sm:$0x1] %vm70_vm1, %v73_v2  ;;  %p260_p4 = scmp.lt.s32.totalorder (%p60_p1), %s258_s15, %s254_s14 }
  0x39   :  { %p261_p5 = por %p260_p4, %p259_p3 }
  0x3b   :  { %p262_p6 = pnand %p261_p5, %p255_p2 }
  0x3d   :  { %v76_v3 = vld [vmem:[#allocation2] sm:$0xff]  ;;  %v77_v5 = vld [vmem:[#allocation2 + $0x8] sm:$0xff] }
  0x3e   :  { %v78_v4 = vld [vmem:[#allocation3] sm:$0xff]  ;;  %v79_v7 = vld [vmem:[#allocation3 + $0x8] sm:$0xff] }
  0x3f   :  { %v80_v6 = vmul.f32 %v78_v4, %v76_v3  ;;  %v81_v8 = vmul.f32 %v79_v7, %v77_v5 }
  0x41   :  { %v83_v9 = vsel %vm82_vm2, %v80_v6, 0.0  ;;  %v86_v10 = vsel %vm82_vm2, %v81_v8, 0.0 }
  0x42   :  { %84 = vadd.xlane.f32.xlu0 %v83_v9 }
  0x46   :  { %87 = vadd.xlane.f32.xlu0 %v86_v10 }
  0xcb   :  { %v85_v11 = vpop.xlane.xlu0 %84 }
  0xcc   :  { %v89_v12 = vsub.f32 0.0, %v85_v11 }
  0xce   :  { %v93_v13 = vand.u32 2147483647, %v89_v12  ;;  %v91_v33 = vmax.f32 %v89_v12, 0.0 }
  0xcf   :  { %v88_v14 = vpop.xlane.xlu0 %87 }
  0xd0   :  { %v95_v15 = vsub.f32 0.0, %v93_v13  ;;  %v90_v16 = vsub.f32 0.0, %v88_v14 }
  0xd2   :  { %v97_v17 = vmul.f32 1.442695, %v95_v15  ;;  %v94_v18 = vand.u32 2147483647, %v90_v16  ;;  %v92_v42 = vmax.f32 %v90_v16, 0.0 }
  0xd4   :  { %186 = vpow2.f32 %v97_v17  ;;  %v96_v19 = vsub.f32 0.0, %v94_v18 }
  0xd6   :  { %v99_v20 = vmul.f32 1.442695, %v96_v19 }
  0xd8   :  { %188 = vpow2.f32 %v99_v20 }
  0xe1   :  { %v187_v21 = vpop.eup %186 }
  0xe2   :  { %v101_v22 = vadd.f32 1.0, %v187_v21  ;;  %v104_v25 = vmul.f32 -0.5, %v187_v21  ;;  %v107_v28 = vand.u32 2147483647, %v187_v21 }
  0xe4   :  { %190 = vlog2.f32 %v101_v22  ;;  %v105_v26 = vadd.f32 1.0, %v104_v25  ;;  %vm108_vm3 = vcmp.lt.f32.partialorder %v107_v28, 0.0004427343 }
  0xe5   :  { %v189_v23 = vpop.eup %188 }
  0xe6   :  { %v110_v24 = vadd.f32 1.0, %v189_v23  ;;  %v113_v27 = vmul.f32 -0.5, %v189_v23  ;;  %v106_v31 = vmul.f32 %v187_v21, %v105_v26  ;;  %v116_v34 = vand.u32 2147483647, %v189_v23 }
  0xe8   :  { %192 = vlog2.f32 %v110_v24  ;;  %v114_v32 = vadd.f32 1.0, %v113_v27  ;;  %vm117_vm4 = vcmp.lt.f32.partialorder %v116_v34, 0.0004427343 }
  0xea   :  { %v115_v40 = vmul.f32 %v189_v23, %v114_v32 }
  0xf1   :  { %v191_v29 = vpop.eup %190 }
  0xf2   :  { %v103_v30 = vmul.f32 0.6931472, %v191_v29 }
  0xf4   :  { %v109_v36 = vsel %vm108_vm3, %v106_v31, %v103_v30 }
  0xf5   :  { %v193_v37 = vpop.eup %192  ;;  %v119_v38 = vadd.f32 %v109_v36, %v91_v33 }
  0xf6   :  { %v112_v39 = vmul.f32 0.6931472, %v193_v37 }
  0xf7   :  { %v123_v41 = vadd.f32 %v121_v35, %v119_v38 }
  0xf8   :  { %v118_v44 = vsel %vm117_vm4, %v115_v40, %v112_v39 }
  0xf9   :  { %126 = vst.msk [vmem:[#allocation4] sm:$0xff] %vm55_vm0, %v123_v41  ;;  %v120_v45 = vadd.f32 %v118_v44, %v92_v42 }
  0xfb   :  { %v124_v46 = vadd.f32 %v122_v43, %v120_v45 }
  0xfd   :  { %127 = vst.msk [vmem:[#allocation4 + $0x8] sm:$0xff] %vm55_vm0, %v124_v46 }
 0x100   :  { %v131_v47 = vld [vmem:[#allocation4] sm:$0xff] }
 0x101   :  { %v133_v49 = vsel %vm55_vm0, %v131_v47, 0.0 }
 0x104   :  { %v132_v48 = vld [vmem:[#allocation4 + $0x8] sm:$0xff] }
 0x105   :  { %v134_v50 = vsel %vm55_vm0, %v132_v48, 0.0 }
 0x106   :  { %v135_v51 = vadd.f32 %v134_v50, %v133_v49 }
 0x108   :  { %v136_v52 = vrot.slane %v135_v51, 4 }
 0x10a   :  { %v137_v53 = vadd.f32 %v136_v52, %v135_v51 }
 0x10c   :  { %v138_v54 = vrot.slane %v137_v53, 2 }
 0x10e   :  { %v139_v55 = vadd.f32 %v138_v54, %v137_v53 }
 0x110   :  { %v140_v56 = vrot.slane %v139_v55, 1 }
 0x112   :  { %v141_v57 = vadd.f32 %v140_v56, %v139_v55 }
 0x114   :  { %v142_v58 = vmul.f32 0.0625, %v141_v57 }
 0x116   :  { %144 = vst.msk [vmem:[#allocation13] sm:$0x1] %vm143_vm5, %v142_v58 }
 0x117   :  { %265 = shalt.err (!%p262_p6)
}
 0x118   :  { %154 = dma.vmem_to_hbm [thread:$0]  %s152_s13, 16, %s347_s4, [#allocation10]  }
 0x119   :  { %284 = dma.done.wait [#allocation10], 16  }
 0x11a   :  { %285 = vsyncadd [#allocation10], 4294967280 }
 0x11b   :  { %158 = vsyncpa [#allocation9], 1 }
 0x11c   :  { %159 = vsyncpa [#allocation12], 1 }
 0x11d   :  { %160 = vsyncpa [#allocation10], 1 }

</bundles_post_ra>
